<compile_context>
chip_gen: v6e
topology: v6e:2x2x1
jax: 0.10.0
libtpu: 0.0.40
codegen_flags: <defaults>
</compile_context>

<pallas_src>
import functools

import jax
import jax.numpy as jnp
import numpy as np
from jax.experimental import pallas as pl
from jax.experimental.pallas import tpu as pltpu


def _round_up(n, m):
    return ((n + m - 1) // m) * m


def _convnet_layer_kernel(adj_ref, x_ref, ut_ref, o_ref):
    adj = adj_ref[...]            # (Np, Np) f32   adjacency of this graph
    x = x_ref[...]                # (Np, D)  f32   node features of this graph
    ut = ut_ref[...]              # (D, D)   f32   U^T (precomputed at init)

    n = adj.shape[0]

    # Binary neighbour mask -- independent of deg, so the first MXU pass can
    # issue immediately (no pop -> reciprocal -> select stall on its input).
    mask = (adj > 0).astype(jnp.float32)                                    # (Np, Np)

    # agg[i, :] = sum_{j in N(i)} x[j, :]
    # Contract over mask's FIRST axis (transposed-LHS matmul) -- no
    # materialised transpose.
    agg = jax.lax.dot_general(
        mask, x,
        dimension_numbers=(((0,), (0,)), ((), ())),
        preferred_element_type=jnp.float32)                                 # (Np, D)

    # deg_i = sum_j adj[j, i], produced directly as an (Np, 1) column (row-scale
    # layout, no lane->sublane transpose) by a tiny MXU pass that runs off the
    # critical path of the two main matmuls.
    ones_col = jnp.ones((n, 1), dtype=jnp.float32)
    deg = jax.lax.dot_general(
        adj, ones_col,
        dimension_numbers=(((0,), (0,)), ((), ())),
        preferred_element_type=jnp.float32)                                 # (Np, 1)

    # Guard zero-degree / padded nodes; exact reciprocal keeps 1e-5 tolerance.
    inv_deg = pl.reciprocal(jnp.maximum(deg, 1e-30), approx=False)          # (Np, 1)

    # out[i, :] = relu((agg[i] @ U^T) / deg_i) == inv_deg_i * relu(agg[i] @ U^T)
    out = jnp.dot(agg, ut, preferred_element_type=jnp.float32)              # (Np, D)
    o_ref[...] = jnp.maximum(out, 0.0) * inv_deg


@jax.jit
def convnet_layer_batched(x, adj_mat, u_t):
    """Batched forward.

    x: (B, N, D) f32, adj_mat: (B, N, N) f32, u_t: (D, D) f32 (== U^T,
    precomputed once at parameter init).  Returns (B, N, D) f32.
    """
    B, N, D = x.shape
    Np = _round_up(N, 8)          # sublane alignment only; no 128-lane padding of D

    if Np != N:
        x_p = jnp.pad(x, ((0, 0), (0, Np - N), (0, 0)))
        adj_p = jnp.pad(adj_mat, ((0, 0), (0, Np - N), (0, Np - N)))
    else:
        x_p, adj_p = x, adj_mat

    out = pl.pallas_call(
        _convnet_layer_kernel,
        out_shape=jax.ShapeDtypeStruct((B, Np, D), jnp.float32),
        grid=(B,),
        in_specs=[
            pl.BlockSpec((None, Np, Np), lambda b: (b, 0, 0)),   # adj  (per graph)
            pl.BlockSpec((None, Np, D), lambda b: (b, 0, 0)),    # x    (per graph)
            pl.BlockSpec((D, D), lambda b: (0, 0)),              # U^T  (shared weight)
        ],
        out_specs=pl.BlockSpec((None, Np, D), lambda b: (b, 0, 0)),
        compiler_params=pltpu.CompilerParams(
            dimension_semantics=("parallel",)),
    )(adj_p, x_p, u_t)

    return out[:, :N, :] if Np != N else out


def convnet_layer(x, adj_mat, u_t):
    """Module-equivalent forward: x (N, D), adj_mat (N, N) -> (1, N, D)."""
    return convnet_layer_batched(x[None], adj_mat[None], u_t)


def _reference(x, adj_mat, U):
    """Pure-JAX reference mirroring the torch loop."""
    mask = (adj_mat > 0).astype(jnp.float32)          # (N, N)
    deg = jnp.sum(adj_mat, axis=0)                    # (N,)
    agg = mask.T @ x                                  # (N, D)
    out = jax.nn.relu((agg @ U.T) / deg[:, None])
    return out[None, :, :]


if __name__ == "__main__":
    key = jax.random.PRNGKey(0)
    k_x, k_adj, k_u = jax.random.split(key, 3)

    N, D, B = 16, 32, 2   # small graphs: 16 nodes, node_dim = 32, batch of 2

    # Node features.
    x_b = jax.random.normal(k_x, (B, N, D), dtype=jnp.float32)

    # Random adjacencies with self-loops so every node has deg > 0.
    adj_b = (jax.random.uniform(k_adj, (B, N, N)) > 0.6).astype(jnp.float32)
    adj_b = jnp.maximum(adj_b, jnp.eye(N, dtype=jnp.float32)[None])

    # Deterministic xavier-uniform init for U (node_dim x node_dim).
    bound = float(np.sqrt(6.0 / (D + D)))
    U = jax.random.uniform(k_u, (D, D), minval=-bound, maxval=bound,
                           dtype=jnp.float32)
    # Weight prep hoisted out of the forward: U^T computed once at init.
    U_T = jnp.transpose(U)

    # Batched path: grid=(B,), "parallel" batch axis.
    out_b = jax.block_until_ready(convnet_layer_batched(x_b, adj_b, U_T))
    assert out_b.shape == (B, N, D)
    for b in range(B):
        ref = _reference(x_b[b], adj_b[b], U)
        np.testing.assert_allclose(np.asarray(out_b[b]), np.asarray(ref[0]),
                                   rtol=1e-5, atol=1e-5)

    # Module-equivalent single-graph call (same kernel, B=1).
    out1 = jax.block_until_ready(convnet_layer(x_b[0], adj_b[0], U_T))
    np.testing.assert_allclose(np.asarray(out1),
                               np.asarray(_reference(x_b[0], adj_b[0], U)),
                               rtol=1e-5, atol=1e-5)
    assert out1.shape == (1, N, D)

    print("KERNEL_OK")
</pallas_src>

<mosaic_0001>
module attributes {stable_mosaic.version = 11 : i64} {
  func.func @_convnet_layer_kernel(%arg0: i32, %arg1: memref<1x16x16xf32, #tpu.memory_space<vmem>>, %arg2: memref<1x16x32xf32, #tpu.memory_space<vmem>>, %arg3: memref<32x32xf32, #tpu.memory_space<vmem>>, %arg4: memref<1x16x32xf32, #tpu.memory_space<vmem>>) attributes {dimension_semantics = [#tpu.dimension_semantics<parallel>], iteration_bounds = array<i64: 2>, scalar_prefetch = 0 : i64, scratch_operands = 0 : i64, tpu.core_type = #tpu.core_type<tc>, window_params = [{transform_indices = @transform_0, window_bounds = array<i64: 1, 16, 16>}, {transform_indices = @transform_1, window_bounds = array<i64: 1, 16, 32>}, {pipeline_mode = #tpu.pipeline_mode<synchronous>, transform_indices = @transform_2, window_bounds = array<i64: 32, 32>}, {transform_indices = @transform_3, window_bounds = array<i64: 1, 16, 32>}]} {
    %c0 = arith.constant 0 : index
    %c0_0 = arith.constant 0 : index
    %c0_1 = arith.constant 0 : index
    %0 = vector.load %arg1[%c0, %c0_0, %c0_1] : memref<1x16x16xf32, #tpu.memory_space<vmem>>, vector<1x16x16xf32>
    %1 = vector.shape_cast %0 : vector<1x16x16xf32> to vector<16x16xf32>
    %c0_2 = arith.constant 0 : index
    %c0_3 = arith.constant 0 : index
    %c0_4 = arith.constant 0 : index
    %2 = vector.load %arg2[%c0_2, %c0_3, %c0_4] : memref<1x16x32xf32, #tpu.memory_space<vmem>>, vector<1x16x32xf32>
    %3 = vector.shape_cast %2 : vector<1x16x32xf32> to vector<16x32xf32>
    %c0_5 = arith.constant 0 : index
    %c0_6 = arith.constant 0 : index
    %4 = vector.load %arg3[%c0_5, %c0_6] : memref<32x32xf32, #tpu.memory_space<vmem>>, vector<32x32xf32>
    %cst = arith.constant 0.000000e+00 : f32
    %5 = vector.broadcast %cst : f32 to vector<16x16xf32>
    %6 = arith.cmpf ogt, %1, %5 : vector<16x16xf32>
    %7 = arith.extui %6 : vector<16x16xi1> to vector<16x16xi32>
    %8 = arith.sitofp %7 : vector<16x16xi32> to vector<16x16xf32>
    %cst_7 = arith.constant dense<0.000000e+00> : vector<16x32xf32>
    %9 = tpu.matmul %8, %3, %cst_7 {dimension_numbers = #tpu.dot_dimension_numbers<[0], [0], [1], [1], [0, 1, 1, 1], [], []>} : vector<16x16xf32>, vector<16x32xf32>, vector<16x32xf32> -> vector<16x32xf32>
    %cst_8 = arith.constant 1.000000e+00 : f32
    %10 = vector.broadcast %cst_8 : f32 to vector<16x1xf32>
    %cst_9 = arith.constant dense<0.000000e+00> : vector<16x1xf32>
    %11 = tpu.matmul %1, %10, %cst_9 {dimension_numbers = #tpu.dot_dimension_numbers<[0], [0], [1], [1], [0, 1, 1, 1], [], []>} : vector<16x16xf32>, vector<16x1xf32>, vector<16x1xf32> -> vector<16x1xf32>
    %cst_10 = arith.constant 1.000000e-30 : f32
    %12 = vector.broadcast %cst_10 : f32 to vector<16x1xf32>
    %13 = arith.maximumf %11, %12 : vector<16x1xf32>
    %14 = tpu.reciprocal %13 : vector<16x1xf32> -> vector<16x1xf32>
    %cst_11 = arith.constant dense<0.000000e+00> : vector<16x32xf32>
    %15 = tpu.matmul %9, %4, %cst_11 {dimension_numbers = #tpu.dot_dimension_numbers<[1], [0], [0], [1], [0, 0, 1, 1], [], []>} : vector<16x32xf32>, vector<32x32xf32>, vector<16x32xf32> -> vector<16x32xf32>
    %cst_12 = arith.constant 0.000000e+00 : f32
    %16 = vector.broadcast %cst_12 : f32 to vector<16x32xf32>
    %17 = arith.maximumf %15, %16 : vector<16x32xf32>
    %18 = vector.broadcast %14 : vector<16x1xf32> to vector<16x32xf32>
    %19 = arith.mulf %17, %18 : vector<16x32xf32>
    %c0_13 = arith.constant 0 : index
    %c0_14 = arith.constant 0 : index
    %c0_15 = arith.constant 0 : index
    %20 = vector.load %arg4[%c0_13, %c0_14, %c0_15] : memref<1x16x32xf32, #tpu.memory_space<vmem>>, vector<1x16x32xf32>
    %21 = vector.shape_cast %20 : vector<1x16x32xf32> to vector<16x32xf32>
    %22 = vector.shape_cast %19 : vector<16x32xf32> to vector<1x16x32xf32>
    tpu.vector_store %arg4[%c0_13, %c0_14, %c0_15], %22 {strides = array<i32>} : memref<1x16x32xf32, #tpu.memory_space<vmem>>, vector<1x16x32xf32>,
    return
  }
  func.func @transform_0(%arg0: i32) -> (i32, i32, i32) {
    %c0_i32 = arith.constant 0 : i32
    %c0_i32_0 = arith.constant 0 : i32
    %c0_i32_1 = arith.constant 0 : i32
    return %arg0, %c0_i32, %c0_i32_0 : i32, i32, i32
  }
  func.func @transform_1(%arg0: i32) -> (i32, i32, i32) {
    %c0_i32 = arith.constant 0 : i32
    %c0_i32_0 = arith.constant 0 : i32
    %c0_i32_1 = arith.constant 0 : i32
    return %arg0, %c0_i32, %c0_i32_0 : i32, i32, i32
  }
  func.func @transform_2(%arg0: i32) -> (i32, i32) {
    %c0_i32 = arith.constant 0 : i32
    %c0_i32_0 = arith.constant 0 : i32
    %c0_i32_1 = arith.constant 0 : i32
    return %c0_i32, %c0_i32_0 : i32, i32
  }
  func.func @transform_3(%arg0: i32) -> (i32, i32, i32) {
    %c0_i32 = arith.constant 0 : i32
    %c0_i32_0 = arith.constant 0 : i32
    %c0_i32_1 = arith.constant 0 : i32
    return %arg0, %c0_i32, %c0_i32_0 : i32, i32, i32
  }
}

</mosaic_0001>

<bundles_post_ra>
// kernel: convnet_layer_batched.1
= control target key start
LH: loop header
LB: loop body
LE: loop exit
PB: predicated region body
PF: predicated region fallthrough
CT: control target
= control target key end

     0   :  { %s1277_s0 = inlined_call_operand.hbm [shape: f32[2,16,16], index: 0, kind: input, shape index: {}]   ;;  %s1278_s1 = inlined_call_operand.hbm [shape: f32[2,16,32], index: 1, kind: input, shape index: {}]   ;;  %s1279_s2 = inlined_call_operand.hbm [shape: f32[32,32], index: 2, kind: input, shape index: {}]   ;;  %s1280_s3 = inlined_call_operand.hbm [shape: f32[2,16,32], index: 3, kind: output, shape index: {}]  }
   0x1   :  { %1288 = sst [smem:[#allocation13_spill]] %s1277_s0 }
   0x2   :  { %1289 = sst [smem:[#allocation14_spill]] %s1279_s2 }
   0x3   :  { %8 = vsyncpa [#allocation3], 0 }
   0x4   :  { %10 = vsyncpa [#allocation3 + $0x1], 0 }
   0x5   :  { %11 = vsyncpa [#allocation6], 0 }
   0x6   :  { %13 = vsyncpa [#allocation6 + $0x1], 0 }
   0x7   :  { %14 = vsyncpa [#allocation4], 0 }
   0x8   :  { %16 = vsyncpa [#allocation4 + $0x1], 0  ;;  %s1037_s12 = smov 0   ;;  %s1039_s13 = smov 0  }
   0x9   :  { %s1041_s14 = smov 0   ;;  %s1043_s15 = smov 0  }
   0xa LB: > { %s1058_s16 = sadd.s32 4294967295, %s1004_s15   ;;  %s705_s17 = sadd.s32 4294967294, %s1004_s15   ;;  %s1004_s15 = sphi %s1043_s15, %s1310_s15   ;;  %s1000_s14 = sphi %s1041_s14, %s1309_s14   ;;  %s996_s13 = sphi %s1039_s13, %s1308_s13   ;;  %s992_s12 = sphi %s1037_s12, %s1307_s12  }
   0xb   : > { %p42_p0 = scmp.ne.s32.totalorder %s996_s13, %s992_s12  ;;  %p1285_p1 = scmp.eq.s32.totalorder %s1058_s16, 0 }
   0xc   : > { %p119_p3 = scmp.eq.s32.totalorder %s705_s17, 1  ;;  %p706_p5 = scmp.ge.s32.totalorder %s1004_s15, 1 }
   0xd   : > { %p1067_p4 = por %p1285_p1, %p42_p0  ;;  %p126_p7 = scmp.lt.s32.totalorder %s1004_s15, 3 }
   0xe   : > { %p1072_p6 = por %p119_p3, %p42_p0  ;;  %s1006_s21 = smov [#allocation7]  }
   0xf   : > { %s1290_s18 = scalar_select %p1067_p4, 1, 0 }
  0x10   : > { %s1291_s19 = scalar_select %p1072_p6, 1, 0 }
  0x11   : > { %p1077_p8 = pnand %p706_p5, %p126_p7  ;;  %s138_s22 = sshll.u32 %s1006_s21, 4  ;;  %s139_s22 = int_to_ptr.vmem [resolvable:$true] %s138_s22 }
  0x12   : > { %s1091_s24 = sadd.s32 1, %s1004_s15   ;;  %s29_s25 = sadd.s32 1, %s1000_s14 }
  0x13   : > { %p785_p9 = pneg %p1077_p8  ;;  %s26_s26 = ssub.s32 %s1004_s15, %s1091_s24 }
  0x14   : > { %s861_s27 = scalar_lea.vmem %s139_s22, 512  ;;  %p869_p5 = scmp.lt.s32.totalorder %s139_s22, %s139_s22 }
  0x15   : > { %p1086_p11 = pnand %p785_p9, %p1285_p1  ;;  %p862_p13 = scmp.ne.s32.totalorder %s139_s22, %s861_s27 }
  0x16   : > { %p870_p7 = scmp.lt.s32.totalorder %s861_s27, %s861_s27 }
  0x17   : > { %p852_p12 = pneg %p1086_p11 }
  0x18   : > { %p871_p10 = por %p870_p7, %p869_p5 }
  0x19   : > { %p864_p0 = pnand %p862_p13, %p852_p12 }
  0x1b   : > { %p865_p3 = pneg %p864_p0 }
  0x1d   : > { %p872_p2 = pnand %p871_p10, %p865_p3 }
  0x1f   : > { %875 = shalt.err (!%p872_p2)
}
  0x20   : > { %s1281_s28 = smov 128   ;;  %s1283_s29 = smov 8  }
  0x21   : > { %s1294_s2 = sld [smem:[#allocation14_spill]]  ;;  %p27_p2 = scmp.eq.s32.totalorder %s26_s26, 0 }
  0x22   : > { %p36_p9 = scmp.ne.s32.totalorder %s1000_s14, %s996_s13  ;;  %p37_p10 = scmp.eq.s32.totalorder %s1004_s15, 0 }
  0x23   : > { %p801_p12 = scmp.lt.s32.totalorder %s1004_s15, 2  ;;  %p1295_p0 = scmp.eq.s32.totalorder %s1058_s16, 1 }
  0x24   : > { %s1111_s5 = scalar_select %p27_p2, %s1000_s14, %s29_s25  }
  0x25   : > { %p38_p13 = por %p37_p10, %p36_p9  ;;  %p1115_p3 = por %p1295_p0, %p36_p9 }
  0x26   : > { %s152_s7 = sand.u32 1, %s1000_s14   ;;  %s733_s8 = sshll.u32 %s1004_s15, 8 }
  0x27   : > { %788 = dma.hbm_to_vmem [thread:$0]  (!%p1086_p11), %s1294_s2, 512, %s139_s22, [#allocation6], %s1281_s28, %s1281_s28, %s1283_s29  }
  0x28   : > { %s1296_s6 = scalar_select %p1115_p3, 1, 0 }
  0x29   : > { %s1121_s9 = sshll.u32 %s152_s7, 4  ;;  %s1297_s0 = sld [smem:[#allocation13_spill]] }
  0x2a   : > { %s156_s21 = scalar_lea.vmem [#allocation2], %s1121_s9  ;;  %p1129_p11 = pnand %p801_p12, %p38_p13 }
  0x2b   : > { %s163_s22 = sshll.u32 %s156_s21, 4  ;;  %s1138_s27 = scalar_lea.hbm %s1278_s1, %s733_s8  ;;  %s1133_s22 = int_to_ptr.vmem [resolvable:$true] %s163_s22 }
  0x2c   : > { %s1140_s30 = scalar_lea.sflag [#allocation3], %s152_s7  ;;  %p878_p7 = pneg %p1129_p11 }
  0x2f   : > { %s1126_s17 = scalar_lea.hbm %s1297_s0, %s733_s8  ;;  %s881_s21 = scalar_lea.hbm %s1297_s0, 512 }
  0x30   : > { %s876_s4 = scalar_lea.hbm %s1126_s17, 256  ;;  %p882_p10 = scmp.lt.s32.totalorder %s1126_s17, %s1297_s0 }
  0x31   : > { %p877_p5 = scmp.ne.s32.totalorder %s1126_s17, %s876_s4  ;;  %p883_p12 = scmp.lt.s32.totalorder %s881_s21, %s876_s4 }
  0x33   : > { %p879_p2 = pnand %p878_p7, %p877_p5  ;;  %p884_p13 = por %p883_p12, %p882_p10 }
  0x35   : > { %p880_p9 = pneg %p879_p2 }
  0x37   : > { %p885_p0 = pnand %p884_p13, %p880_p9 }
  0x39   : > { %888 = shalt.err (!%p885_p0)
}
  0x3a   : > { %s889_s7 = scalar_lea.vmem %s1133_s22, 256  ;;  %s1009_s8 = smov [#allocation2]  }
  0x3b   : > { %p890_p1 = scmp.ne.s32.totalorder %s1133_s22, %s889_s7  ;;  %s894_s25 = sshll.u32 %s1009_s8, 4  ;;  %s895_s25 = int_to_ptr.vmem [resolvable:$false] %s894_s25 }
  0x3c   : > { %s896_s26 = scalar_lea.vmem %s895_s25, 512  ;;  %p897_p6 = scmp.lt.s32.totalorder %s1133_s22, %s895_s25 }
  0x3d   : > { %p892_p5 = pnand %p890_p1, %p878_p7  ;;  %p898_p3 = scmp.lt.s32.totalorder %s896_s26, %s889_s7 }
  0x3f   : > { %p893_p2 = pneg %p892_p5  ;;  %p899_p4 = por %p898_p3, %p897_p6 }
  0x41   : > { %p900_p10 = pnand %p899_p4, %p893_p2 }
  0x43   : > { %903 = shalt.err (!%p900_p10)
}
  0x44   : > { %s1299_s28 = smov 8   ;;  %s1300_s29 = smov 128  }
  0x45   : > { %792 = dma.hbm_to_vmem [thread:$0]  (!%p1129_p11), %s1126_s17, 256, %s1133_s22, %s1140_s30, %s1300_s29, %s1300_s29, %s1299_s28  }
  0x46   : > { %s177_s4 = scalar_lea.vmem [#allocation5], %s1121_s9  ;;  %s173_s11 = sand.u32 1, %s1004_s15  }
  0x47   : > { %s184_s10 = sshll.u32 %s177_s4, 4  ;;  %s174_s21 = scalar_lea.sflag [#allocation6], %s173_s11  ;;  %s1172_s10 = int_to_ptr.vmem [resolvable:$true] %s184_s10 }
  0x48   : > { %s904_s7 = scalar_lea.hbm %s1138_s27, 256  ;;  %s909_s26 = scalar_lea.hbm %s1278_s1, 512 }
  0x49   : > { %p905_p1 = scmp.ne.s32.totalorder %s1138_s27, %s904_s7  ;;  %p910_p3 = scmp.lt.s32.totalorder %s1138_s27, %s1278_s1 }
  0x4a   : > { %p911_p9 = scmp.lt.s32.totalorder %s909_s26, %s904_s7 }
  0x4b   : > { %p907_p4 = pnand %p905_p1, %p878_p7 }
  0x4c   : > { %p912_p12 = por %p911_p9, %p910_p3 }
  0x4d   : > { %p908_p6 = pneg %p907_p4 }
  0x4f   : > { %p913_p13 = pnand %p912_p12, %p908_p6 }
  0x51   : > { %916 = shalt.err (!%p913_p13)
}
  0x52   : > { %s917_s9 = scalar_lea.vmem %s1172_s10, 256  ;;  %s1010_s17 = smov [#allocation5]  }
  0x53   : > { %p918_p0 = scmp.ne.s32.totalorder %s1172_s10, %s917_s9  ;;  %s922_s22 = sshll.u32 %s1010_s17, 4  ;;  %s923_s22 = int_to_ptr.vmem [resolvable:$false] %s922_s22 }
  0x54   : > { %s924_s30 = scalar_lea.vmem %s923_s22, 512  ;;  %p925_p10 = scmp.lt.s32.totalorder %s1172_s10, %s923_s22 }
  0x55   : > { %p920_p5 = pnand %p918_p0, %p878_p7  ;;  %p926_p1 = scmp.lt.s32.totalorder %s924_s30, %s917_s9 }
  0x57   : > { %p921_p2 = pneg %p920_p5  ;;  %p927_p4 = por %p926_p1, %p925_p10 }
  0x59   : > { %p928_p3 = pnand %p927_p4, %p921_p2 }
  0x5b   : > { %931 = shalt.err (!%p928_p3)
}
  0x5c   : > { %795 = dma.hbm_to_vmem [thread:$0]  (!%p1129_p11), %s1138_s27, 256, %s1172_s10, %s174_s21, %s1300_s29, %s1300_s29, %s1299_s28  }
  0x5d   : > { %196 = sbr.rel (%p1077_p8) target bundleno = 646 (0x286), region = 32  ;;  %s1202_s0 = sand.u32 (!%p1077_p8), 1, %s996_s13  }
  0x5e   : > { %s1205_s2 = sshll.u32 (!%p1077_p8), %s1202_s0, 4  ;;  %s199_s4 = scalar_lea.sflag (!%p1077_p8), [#allocation3], %s1202_s0 }
  0x5f   : > { %s202_s23 = scalar_lea.vmem (!%p1077_p8), [#allocation2], %s1205_s2  ;;  %p1301_p7 = scmp.ne.s32.totalorder (!%p1077_p8), %s1290_s18, 0 }
  0x62   : > { %975 = dma.done.wait (%p1301_p7), %s199_s4, 256  }
  0x63   : > { %977 = vsyncadd (%p1301_p7), %s199_s4, 4294967040  ;;  %s207_s20 = sand.u32 1, %s1058_s16   ;;  %s211_s28 = scalar_lea.vmem [#allocation5], %s1205_s2 }
  0x64   : > { %s208_s27 = scalar_lea.sflag [#allocation6], %s207_s20 }
  0x65   : > { %979 = dma.done.wait (%p1301_p7), %s208_s27, 256  }
  0x66   : > { %981 = vsyncadd (%p1301_p7), %s208_s27, 4294967040  ;;  %p1302_p8 = scmp.eq.s32.totalorder %s1058_s16, 0 }
  0x68   : > { %983 = dma.done.wait (%p1302_p8), [#allocation6], 512   ;;  %p1303_p11 = pmov %p1302_p8 }
  0x69   : > { %v243_v0 = vld [vmem:[%s202_s23] sm:$0xff]  ;;  %v244_v1 = vld [vmem:[%s202_s23 + $0x8] sm:$0xff]  ;;  %v1011_v4 = vmov 0.0   ;;  %v1012_v7 = vmov 1.0   ;;  %vm289_vm2 = vcmask 130048   ;;  %v1013_v16 = vmov 0  }
  0x6a   : > { %985 = vsyncadd (%p1303_p11), [#allocation6], 4294966784  ;;  %v246_v2 = vld [vmem:[%s211_s28 + $0x8] sm:$0xff]  ;;  %vm251_vm0 = vcmp.gt.f32.partialorder %v243_v0, 0.0  ;;  %vm252_vm1 = vcmp.gt.f32.partialorder %v244_v1, 0.0  ;;  %371 = vxpose.xlu1.b32.start [1/2] (short) (narrow) %v243_v0, 16 }
  0x6b   : > { %750 = vmatprep.subr.mxu1 %v246_v2  ;;  %v245_v3 = vld [vmem:[%s211_s28] sm:$0xff]  ;;  %v720_v5 = vsel %vm251_vm0, 1.0, %v1011_v4  ;;  %v721_v6 = vsel %vm252_vm1, 1.0, %v1011_v4  ;;  %v250_v8 = vld [vmem:[#allocation7 + $0x18] sm:$0xff]  ;;  %v248_v14 = vld [vmem:[#allocation7 + $0x8] sm:$0xff]  ;;  %vm488_vm3 = vcmask 261120  }
  0x6c   : > { %751 = vmatpush3.msra.mxu1 %v246_v2  ;;  %257 = vxpose.xlu0.b32.start [1/2] (short) (narrow) %v720_v5, 16  ;;  %v249_v9 = vld [vmem:[#allocation7 + $0x10] sm:$0xff]  ;;  %v247_v15 = vld [vmem:[#allocation7] sm:$0xff]  ;;  %s242_s18 = scalar_lea.vmem [#allocation8], %s1205_s2  ;;  %s735_s10 = sshll.u32 %s1058_s16, 8 }
  0x6d   : > { %752 = vmatprep.subr.mxu1 %v245_v3  ;;  %764 = vmatprep.subr.mxu0 %v250_v8  ;;  %s600_s29 = sshll.u32 %s242_s18, 4  ;;  %s1232_s7 = scalar_lea.hbm %s1280_s3, %s735_s10  ;;  %s1227_s29 = int_to_ptr.vmem [resolvable:$true] %s600_s29 }
  0x6e   : > { %753 = vmatpush3.msra.mxu1 %v245_v3  ;;  %372 = vxpose.xlu1.b32.end [2/2] (short) (narrow) %v244_v1, 16  ;;  %s587_s16 = scalar_lea.sflag [#allocation4], %s1202_s0  ;;  %s932_s8 = scalar_lea.vmem %s1227_s29, 256 }
  0x6f   : > { %757 = vmatprep.subr.mxu1 %v1012_v7  ;;  %765 = vmatpush3.msra.mxu0 %v250_v8  ;;  %p933_p6 = scmp.ne.s32.totalorder %s1227_s29, %s932_s8  ;;  %p1304_p9 = scmp.ne.s32.totalorder %s1296_s6, 0 }
  0x70   : > { %258 = vxpose.xlu0.b32.end [2/2] (short) (narrow) %v721_v6, 16  ;;  %766 = vmatprep.subr.mxu0 %v249_v9  ;;  %s1014_s25 = smov [#allocation8]  }
  0x71   : > { %767 = vmatpush3.msra.mxu0 %v249_v9  ;;  %p934_p12 = pnand %p933_p6, %p1304_p9  ;;  %s936_s26 = sshll.u32 %s1014_s25, 4  ;;  %s937_s26 = int_to_ptr.vmem [resolvable:$false] %s936_s26 }
  0x72   : > { %768 = vmatprep.subr.mxu0 %v248_v14  ;;  %s938_s9 = scalar_lea.vmem %s937_s26, 512  ;;  %p939_p0 = scmp.lt.s32.totalorder %s1227_s29, %s937_s26 }
  0x73   : > { %769 = vmatpush3.msra.mxu0 %v248_v14  ;;  %p935_p13 = pneg %p934_p12  ;;  %p940_p5 = scmp.lt.s32.totalorder %s938_s9, %s932_s8 }
  0x74   : > { %770 = vmatprep.subr.mxu0 %v247_v15 }
  0x75   : > { %771 = vmatpush3.msra.mxu0 %v247_v15  ;;  %p941_p2 = por %p940_p5, %p939_p0 }
  0x77   : > { %p942_p10 = pnand %p941_p2, %p935_p13 }
  0x8c   : > { %845 = vset.pattern.permute.xlu1 %v1013_v16 }
  0x99   : > { %844 = vset.pattern.permute.xlu0 %v1013_v16 }
  0xe6   : > { %v387_v11 = vpop.trf.xlu1 }
  0xe8   : > { %v273_v10 = vpop.trf.xlu0 }
  0xe9   : > { %754 = vmatprep.mubr.msk.f32.mxu1 %vm289_vm2, %v273_v10 }
  0xea   : > { %v388_v13 = vpop.trf.xlu1 }
  0xec   : > { %v274_v12 = vpop.trf.xlu0 }
  0xed   : > { %755 = vmatmul.mubr.msk.f32.vlgmr.msra.gmra.mxu1 %vm289_vm2, %v274_v12 }
  0xee   : > { %758 = vmatpush3.msra.mxu1 %v1012_v7  ;;  %761 = vmatprep.mubr.msk.f32.mxu1 %vm289_vm2, %v387_v11 }
  0xef   : > { %759 = vmatprep.subr.mxu1 %v1012_v7 }
  0xf0   : > { %760 = vmatpush3.msra.mxu1 %v1012_v7 }
  0xf1   : > { %762 = vmatmul.mubr.msk.f32.vlgmr.msra.gmra.mxu1 %vm289_vm2, %v388_v13 }
 0x1ad   : > { %v756_v17 = vpop.f32.mrf.mxu1 }
 0x1af   : > { %v362_v18 = vpop.f32.mrf.mxu1 }
 0x1b0   : > { %772 = vmatprep.mubr.msk.f32.mxu0 %vm488_vm3, %v362_v18 }
 0x1b1   : > { %773 = vmatmul.mubr.msk.f32.vlgmr.msra.gmra.mxu0 %vm488_vm3, %v756_v17  ;;  %v763_v19 = vpop.f32.mrf.mxu1 }
 0x1b2   : > { %v485_v20 = vmax.f32 %v763_v19, 1e-30 }
 0x1b3   : > { %v475_v21 = vpop.f32.mrf.mxu1 }
 0x1b4   : > { %846 = vrcp.f32 %v485_v20  ;;  %v484_v22 = vmax.f32 %v475_v21, 1e-30 }
 0x1b6   : > { %848 = vrcp.f32 %v484_v22 }
 0x1c1   : > { %v847_v23 = vpop.eup %846 }
 0x1c2   : > { %579 = vperm.xlu1 %845, %v847_v23  }
 0x1c3   : > { %v849_v24 = vpop.eup %848 }
 0x1c4   : > { %574 = vperm.xlu0 %844, %v849_v24  }
 0x23d   : > { %v580_v26 = vpop.permute.xlu1 %579 }
 0x23f   : > { %v575_v31 = vpop.permute.xlu0 %574 }
 0x271   : > { %v774_v25 = vpop.f32.mrf.mxu0 }
 0x272   : > { %v571_v27 = vmax.f32 %v774_v25, 0.0 }
 0x273   : > { %v561_v28 = vpop.f32.mrf.mxu0 }
 0x274   : > { %v570_v29 = vmax.f32 %v561_v28, 0.0  ;;  %v583_v30 = vmul.f32 %v580_v26, %v571_v27 }
 0x276   : > { %585 = vst.msk [vmem:[%s242_s18 + $0x8] sm:$0xff] %vm488_vm3, %v583_v30  ;;  %v582_v32 = vmul.f32 %v575_v31, %v570_v29 }
 0x278   : > { %584 = vst.msk [vmem:[%s242_s18] sm:$0xff] %vm488_vm3, %v582_v32 }
 0x279   : > { %945 = shalt.err (!%p942_p10)
}
 0x27a   : > { %s946_s17 = scalar_lea.hbm %s1232_s7, 256  ;;  %s950_s2 = scalar_lea.hbm %s1280_s3, 512 }
 0x27b   : > { %p947_p1 = scmp.ne.s32.totalorder %s1232_s7, %s946_s17  ;;  %p951_p7 = scmp.lt.s32.totalorder %s1232_s7, %s1280_s3 }
 0x27c   : > { %p952_p8 = scmp.lt.s32.totalorder %s950_s2, %s946_s17 }
 0x27d   : > { %p948_p4 = pnand %p947_p1, %p1304_p9 }
 0x27e   : > { %p953_p11 = por %p952_p8, %p951_p7 }
 0x27f   : > { %p949_p3 = pneg %p948_p4 }
 0x281   : > { %p954_p6 = pnand %p953_p11, %p949_p3 }
 0x283   : > { %957 = shalt.err (!%p954_p6)
}
 0x284   : > { %s1015_s20 = smov 128   ;;  %s1016_s27 = smov 8  }
 0x285   : > { %783 = dma.vmem_to_hbm [thread:$0]  (%p1304_p9), %s1227_s29, 256, %s1232_s7, %s587_s16, %s1015_s20, %s1015_s20, %s1016_s27  }
 0x286 PF: > { %s615_s28 = sand.u32 1, %s992_s12   ;;  %p1305_p12 = scmp.ne.s32.totalorder %s1291_s19, 0 }
 0x287   : > { %p1306_p13 = scmp.ge.s32.totalorder %s1004_s15, 2  ;;  %s616_s18 = scalar_lea.sflag [#allocation4], %s615_s28 }
 0x289   : > { %p797_p0 = pnand %p1306_p13, %p1305_p12 }
 0x28b   : > { %p798_p5 = pneg %p797_p0 }
 0x28d   : > { %987 = dma.done.wait (%p798_p5), %s616_s18, 256  }
 0x28e   : > { %989 = vsyncadd (%p798_p5), %s616_s18, 4294967040  ;;  %p19_p2 = scmp.ge.s32.totalorder %s1091_s24, 4   ;;  %s1307_s12 = smov %s996_s13 }
 0x28f   : > { %s1308_s13 = smov %s1000_s14  ;;  %s1309_s14 = smov %s1111_s5 }
 0x290   : > { %s1310_s15 = smov %s1091_s24  ;;  %21 = sbr.rel (!%p19_p2) target bundleno = 10 (0xa), region = 94 }
 0x295   :  { %621 = vsyncpa [#allocation3], 1 }
 0x296   :  { %623 = vsyncpa [#allocation3 + $0x1], 1 }
 0x297   :  { %624 = vsyncpa [#allocation6], 1 }
 0x298   :  { %626 = vsyncpa [#allocation6 + $0x1], 1 }
 0x299   :  { %627 = vsyncpa [#allocation4], 1 }
 0x29a   :  { %629 = vsyncpa [#allocation4 + $0x1], 1 }

</bundles_post_ra>
